<compile_context>
chip_gen: v7x
topology: tpu7x:2x2x1
jax: 0.10.0
libtpu: 0.0.40
codegen_flags: <defaults>
</compile_context>

<pallas_src>
import functools

import jax
import jax.numpy as jnp
from jax import lax
from jax.experimental import pallas as pl
from jax.experimental.pallas import tpu as pltpu


# ----------------------------------------------------------------------------
# Hardware-aware sizing helpers
# ----------------------------------------------------------------------------
def _vmem_capacity_bytes():
    try:
        return int(pltpu.get_tpu_info().vmem_capacity_bytes)
    except Exception:
        return 64 << 20            # conservative default (v7x per-TC VMEM)


def _choose_tile_k(c, hw, itemsize, tile_k=None):
    """HW-chunk width TK: a multiple of 128, or the full HW extent."""
    if tile_k is not None:
        tk = int(min(tile_k, hw))
        assert tk == hw or tk % 128 == 0, "tile_k must be a multiple of 128"
        return tk
    cap = _vmem_capacity_bytes()
    # budget for the double-buffered (C, TK) feature chunk:
    #   v7x (64 MiB) -> ~22 MiB; v5e/v6e (128 MiB) -> ~44 MiB
    feat_budget = min(48 << 20, max(8 << 20, int(0.35 * cap)))
    tk_cap = feat_budget // (2 * c * itemsize)
    tk_cap = max(128, (tk_cap // 128) * 128)
    return hw if hw <= tk_cap else tk_cap


def _vmem_limit_bytes(est_bytes):
    cap = _vmem_capacity_bytes()
    # ~15% headroom below physical VMEM (Mosaic needs internal scratch).
    return int(min(int(0.85 * cap), max(32 << 20, 2 * int(est_bytes))))


def _prep(x, compute_dtype, tile_k):
    """(B, C, H, W) -> (B, C, HW) features in compute_dtype + tiling metadata."""
    b, c, h, w = x.shape
    hw = h * w
    feats = x.reshape(b, c, hw).astype(compute_dtype)
    itemsize = jnp.dtype(compute_dtype).itemsize
    tk = _choose_tile_k(c, hw, itemsize, tile_k)
    num_k = -(-hw // tk)
    return feats, hw, tk, num_k, itemsize


# ----------------------------------------------------------------------------
# Kernel 1: per-batch partial Gram matrices (HW-chunked, optional S-way split)
# ----------------------------------------------------------------------------
def _gram_partial_kernel(f_ref, g_ref, acc_ref, *, tk, hw, kp, needs_mask,
                         inv_norm):
    # f_ref: (1, C, TK)   g_ref: (1, 1, C, C)   acc_ref: (C, C) f32 scratch
    s = pl.program_id(1)
    k = pl.program_id(2)

    @pl.when(k == 0)
    def _():
        acc_ref[...] = jnp.zeros_like(acc_ref)

    f = f_ref[0]                                           # (C, TK)
    if needs_mask:
        # Ragged tail / over-allocated split chunk: zero the lanes that fall
        # outside the true HW extent (replaces the host-side jnp.pad).
        g_idx = s * kp + k                                 # global chunk index
        col = g_idx * tk + lax.broadcasted_iota(jnp.int32, f.shape, 1)
        f = jnp.where(col < hw, f, jnp.zeros_like(f))

    # Contract the last (lane) axis of both operands -> F @ F^T on the MXU
    # without an explicit XLU transpose of the (C, TK) tile.
    acc_ref[...] += lax.dot_general(
        f, f, dimension_numbers=(((1,), (1,)), ((), ())),
        preferred_element_type=jnp.float32)

    @pl.when(k == kp - 1)
    def _():
        g_ref[...] = (acc_ref[...] * inv_norm)[None, None].astype(g_ref.dtype)


def _partial_grams(feats, hw, tk, num_k, itemsize, num_splits, inv_norm):
    """Returns (B, S, C, C) float32 partial grams (already normalized)."""
    b, c, _ = feats.shape
    s = max(1, min(int(num_splits), num_k))
    kp = -(-num_k // s)                       # chunks handled per split
    needs_mask = (s * kp * tk != hw)
    max_chunk = num_k - 1

    def f_map(i, j, k):
        # clamp so a fully-overflowing split chunk still DMAs a valid block
        # (its contribution is zeroed by the in-kernel mask)
        return (i, 0, jnp.minimum(j * kp + k, max_chunk))

    vmem_limit = _vmem_limit_bytes(
        2 * c * tk * itemsize       # double-buffered feature chunk
        + 2 * c * c * 4             # double-buffered output gram block
        + c * c * 4)                # accumulator scratch

    return pl.pallas_call(
        functools.partial(_gram_partial_kernel, tk=tk, hw=hw, kp=kp,
                          needs_mask=needs_mask, inv_norm=inv_norm),
        out_shape=jax.ShapeDtypeStruct((b, s, c, c), jnp.float32),
        grid_spec=pltpu.PrefetchScalarGridSpec(
            num_scalar_prefetch=0,
            grid=(b, s, kp),
            in_specs=[pl.BlockSpec((1, c, tk), f_map)],
            out_specs=pl.BlockSpec((1, 1, c, c), lambda i, j, k: (i, j, 0, 0)),
            scratch_shapes=[pltpu.VMEM((c, c), jnp.float32)],
        ),
        compiler_params=pltpu.CompilerParams(
            dimension_semantics=("parallel", "parallel", "arbitrary"),
            vmem_limit_bytes=vmem_limit),
    )(feats)


def gram_matrix(x, *, compute_dtype=jnp.bfloat16, tile_k=None, num_splits=None):
    """x: (B, C, H, W) -> (B, C, C) float32,  F @ F^T / (C*H*W)."""
    b, c, h, w = x.shape
    feats, hw, tk, num_k, itemsize = _prep(x, compute_dtype, tile_k)
    if num_splits is None:
        # v7x has two TensorCores; with B == 1 the only parallel axis would be
        # size 1, so split the HW reduction instead (harmless on v5e/v6e).
        num_splits = 2 if (b == 1 and num_k >= 2) else 1
    inv_norm = 1.0 / float(c * h * w)
    partial = _partial_grams(feats, hw, tk, num_k, itemsize, num_splits,
                             inv_norm)
    return partial.sum(axis=1)


# ----------------------------------------------------------------------------
# Kernel 2: fused gram(inputs) + squared error vs. target gram, per batch
# ----------------------------------------------------------------------------
def _style_sse_kernel(f_ref, t_ref, sse_ref, acc_ref, *, tk, hw, needs_mask,
                      inv_norm):
    # f_ref: (1, C, TK)  t_ref: (1, C, C)  sse_ref: (1, 1, 1)  acc_ref: (C, C)
    k = pl.program_id(1)

    @pl.when(k == 0)
    def _():
        acc_ref[...] = jnp.zeros_like(acc_ref)

    f = f_ref[0]                                           # (C, TK)
    if needs_mask:
        col = k * tk + lax.broadcasted_iota(jnp.int32, f.shape, 1)
        f = jnp.where(col < hw, f, jnp.zeros_like(f))

    acc_ref[...] += lax.dot_general(
        f, f, dimension_numbers=(((1,), (1,)), ((), ())),
        preferred_element_type=jnp.float32)

    @pl.when(k == pl.num_programs(1) - 1)
    def _():
        # single cross-lane reduce per batch, only at the final chunk
        diff = acc_ref[...] * inv_norm - t_ref[0].astype(jnp.float32)
        sse_ref[...] = jnp.sum(diff * diff).reshape(1, 1, 1)


def style_loss(x, target_gram, *, compute_dtype=jnp.bfloat16, tile_k=None,
               num_splits=None):
    """x: (B, C, H, W); target_gram: (B, C, C). Scalar MSE style loss."""
    b, c, h, w = x.shape
    feats, hw, tk, num_k, itemsize = _prep(x, compute_dtype, tile_k)
    inv_norm = 1.0 / float(c * h * w)
    if num_splits is None:
        num_splits = 2 if (b == 1 and num_k >= 2) else 1
    num_splits = max(1, min(int(num_splits), num_k))

    if num_splits > 1:
        # HW reduction split across a parallel axis (v7x two-TC, B=1 case);
        # combining the partial grams + SSE in plain JAX is tiny vs. F read.
        partial = _partial_grams(feats, hw, tk, num_k, itemsize, num_splits,
                                 inv_norm)
        gram = partial.sum(axis=1)
        diff = gram - target_gram.astype(jnp.float32)
        return jnp.mean(diff * diff)

    needs_mask = (num_k * tk != hw)
    vmem_limit = _vmem_limit_bytes(
        2 * c * tk * itemsize + 2 * c * c * 4 + c * c * 4)

    per_batch_sse = pl.pallas_call(
        functools.partial(_style_sse_kernel, tk=tk, hw=hw,
                          needs_mask=needs_mask, inv_norm=inv_norm),
        out_shape=jax.ShapeDtypeStruct((b, 1, 1), jnp.float32),
        grid_spec=pltpu.PrefetchScalarGridSpec(
            num_scalar_prefetch=0,
            grid=(b, num_k),
            in_specs=[
                pl.BlockSpec((1, c, tk), lambda i, k: (i, 0, k)),
                pl.BlockSpec((1, c, c), lambda i, k: (i, 0, 0)),
            ],
            out_specs=pl.BlockSpec((1, 1, 1), lambda i, k: (i, 0, 0)),
            scratch_shapes=[pltpu.VMEM((c, c), jnp.float32)],
        ),
        compiler_params=pltpu.CompilerParams(
            dimension_semantics=("parallel", "arbitrary"),
            vmem_limit_bytes=vmem_limit),
    )(feats, target_gram.astype(jnp.float32))

    # mse_loss(gram, target) == sum_b SSE_b / (B*C*C)
    return jnp.sum(per_batch_sse) / float(b * c * c)


# ----------------------------------------------------------------------------
# Pure functional forward (jit-safe) + nn.Module-like wrapper
# ----------------------------------------------------------------------------
def style_loss_forward(inputs, target_gram, *, compute_dtype=jnp.bfloat16,
                       tile_k=None, num_splits=None):
    """Returns (inputs, loss) — the jit/transform-safe form of forward()."""
    loss = style_loss(inputs, target_gram, compute_dtype=compute_dtype,
                      tile_k=tile_k, num_splits=num_splits)
    return inputs, loss


class StyleLoss:
    """Mirrors the PyTorch module: __call__ returns inputs, stores self.loss."""

    def __init__(self, target, *, compute_dtype=jnp.bfloat16, tile_k=None,
                 num_splits=None):
        self._compute_dtype = compute_dtype
        self._tile_k = tile_k
        self._num_splits = num_splits
        # "detached" constant target gram (float32)
        self.target = gram_matrix(target, compute_dtype=compute_dtype,
                                  tile_k=tile_k, num_splits=num_splits)
        self.loss = None

    def __call__(self, inputs):
        # NOTE: storing self.loss as a Python side effect mirrors nn.Module but
        # is not jit-safe; use style_loss_forward() inside jax.jit.
        inputs, self.loss = style_loss_forward(
            inputs, self.target, compute_dtype=self._compute_dtype,
            tile_k=self._tile_k, num_splits=self._num_splits)
        return inputs


# TODO(synk): pallas_call has no reverse-mode rule; add jax.custom_vjp
# (dL/dF = 4/(B*C*C*(C*H*W)) * (G_x - G_t) @ F) before using this loss inside a
# gradient-based style-transfer optimization loop.


# ----------------------------------------------------------------------------
# Self-test
# ----------------------------------------------------------------------------
if __name__ == "__main__":
    def ref_gram(a):
        b, c, h, w = a.shape
        f = a.reshape(b, c, h * w)
        return jnp.einsum("bij,bkj->bik", f, f,
                          precision=lax.Precision.HIGHEST) / (c * h * w)

    key = jax.random.PRNGKey(0)
    k_t, k_x, k_t2, k_x2 = jax.random.split(key, 4)

    # --- case 1: module path (default bf16 features), single HW chunk -------
    B, C, H, W = 2, 4, 16, 16
    target = jax.random.normal(k_t, (B, C, H, W), dtype=jnp.float32)
    x = jax.random.normal(k_x, (B, C, H, W), dtype=jnp.float32)

    module = StyleLoss(target)               # bf16 features, f32 accumulation
    out = module(x)
    loss_bf16 = module.loss
    jax.block_until_ready((out, loss_bf16))

    ref_loss = jnp.mean((ref_gram(x) - ref_gram(target)) ** 2)
    assert out.shape == x.shape
    assert jnp.allclose(loss_bf16, ref_loss, rtol=5e-2, atol=1e-4), (
        loss_bf16, ref_loss)

    # f32 compute path: tight tolerances against the f32 reference
    tgram_f32 = gram_matrix(target, compute_dtype=jnp.float32)
    _, loss_f32 = style_loss_forward(x, tgram_f32, compute_dtype=jnp.float32)
    jax.block_until_ready((tgram_f32, loss_f32))
    assert jnp.allclose(tgram_f32, ref_gram(target), rtol=1e-4, atol=1e-5)
    assert jnp.allclose(loss_f32, ref_loss, rtol=1e-4, atol=1e-6), (
        loss_f32, ref_loss)

    # --- case 2: ragged HW tail (144 cols, TK=128) + 2-way HW split ----------
    B2, C2, H2, W2 = 2, 8, 12, 12            # HW = 144 -> chunks of 128 + 16
    target2 = jax.random.normal(k_t2, (B2, C2, H2, W2), dtype=jnp.float32)
    x2 = jax.random.normal(k_x2, (B2, C2, H2, W2), dtype=jnp.float32)

    tgram2 = gram_matrix(target2, compute_dtype=jnp.float32, tile_k=128,
                         num_splits=2)
    ref_loss2 = jnp.mean((ref_gram(x2) - ref_gram(target2)) ** 2)
    # split path (partial-gram kernel + JAX combine)
    _, loss2_split = style_loss_forward(x2, tgram2, compute_dtype=jnp.float32,
                                        tile_k=128, num_splits=2)
    # fused path (per-batch SSE kernel, in-kernel tail masking)
    _, loss2_fused = style_loss_forward(x2, tgram2, compute_dtype=jnp.float32,
                                        tile_k=128, num_splits=1)
    jax.block_until_ready((tgram2, loss2_split, loss2_fused))

    assert jnp.allclose(tgram2, ref_gram(target2), rtol=1e-4, atol=1e-5)
    assert jnp.allclose(loss2_split, ref_loss2, rtol=1e-4, atol=1e-6), (
        loss2_split, ref_loss2)
    assert jnp.allclose(loss2_fused, ref_loss2, rtol=1e-4, atol=1e-6), (
        loss2_fused, ref_loss2)

    print("KERNEL_OK")
</pallas_src>

<mosaic_0001>
module attributes {stable_mosaic.version = 11 : i64} {
  func.func @_gram_partial_kernel(%arg0: i32, %arg1: i32, %arg2: i32, %arg3: memref<1x4x256xbf16, #tpu.memory_space<vmem>>, %arg4: memref<1x1x4x4xf32, #tpu.memory_space<vmem>>, %arg5: memref<4x4xf32, #tpu.memory_space<vmem>>) attributes {dimension_semantics = [#tpu.dimension_semantics<parallel>, #tpu.dimension_semantics<parallel>, #tpu.dimension_semantics<arbitrary>], iteration_bounds = array<i64: 2, 1, 1>, scalar_prefetch = 0 : i64, scratch_operands = 1 : i64, tpu.core_type = #tpu.core_type<tc>, window_params = [{transform_indices = @transform_0, window_bounds = array<i64: 1, 4, 256>}, {transform_indices = @transform_1, window_bounds = array<i64: 1, 1, 4, 4>}]} {
    %c0_i32 = arith.constant 0 : i32
    %0 = arith.cmpi eq, %arg2, %c0_i32 : i32
    %1 = arith.extui %0 : i1 to i32
    %c0_i32_0 = arith.constant 0 : i32
    %2 = arith.cmpi ne, %1, %c0_i32_0 : i32
    scf.if %2 {
      %cst_9 = arith.constant 0.000000e+00 : f32
      %12 = vector.broadcast %cst_9 : f32 to vector<4x4xf32>
      %c0_10 = arith.constant 0 : index
      %c0_11 = arith.constant 0 : index
      %13 = vector.load %arg5[%c0_10, %c0_11] : memref<4x4xf32, #tpu.memory_space<vmem>>, vector<4x4xf32>
      tpu.vector_store %arg5[%c0_10, %c0_11], %12 {strides = array<i32>} : memref<4x4xf32, #tpu.memory_space<vmem>>, vector<4x4xf32>,
    } else {
    }
    %c0 = arith.constant 0 : index
    %c0_1 = arith.constant 0 : index
    %c0_2 = arith.constant 0 : index
    %3 = vector.load %arg3[%c0, %c0_1, %c0_2] : memref<1x4x256xbf16, #tpu.memory_space<vmem>>, vector<1x4x256xbf16>
    %4 = vector.shape_cast %3 : vector<1x4x256xbf16> to vector<4x256xbf16>
    %c0_3 = arith.constant 0 : index
    %c0_4 = arith.constant 0 : index
    %5 = vector.load %arg5[%c0_3, %c0_4] : memref<4x4xf32, #tpu.memory_space<vmem>>, vector<4x4xf32>
    %cst = arith.constant dense<0.000000e+00> : vector<4x4xf32>
    %6 = tpu.matmul %4, %4, %cst {dimension_numbers = #tpu.dot_dimension_numbers<[1], [1], [0], [0], [0, 0, 1, 0], [], []>} : vector<4x256xbf16>, vector<4x256xbf16>, vector<4x4xf32> -> vector<4x4xf32>
    %7 = arith.addf %5, %6 : vector<4x4xf32>
    %c0_5 = arith.constant 0 : index
    %c0_6 = arith.constant 0 : index
    %8 = vector.load %arg5[%c0_5, %c0_6] : memref<4x4xf32, #tpu.memory_space<vmem>>, vector<4x4xf32>
    tpu.vector_store %arg5[%c0_5, %c0_6], %7 {strides = array<i32>} : memref<4x4xf32, #tpu.memory_space<vmem>>, vector<4x4xf32>,
    %c0_i32_7 = arith.constant 0 : i32
    %9 = arith.cmpi eq, %arg2, %c0_i32_7 : i32
    %10 = arith.extui %9 : i1 to i32
    %c0_i32_8 = arith.constant 0 : i32
    %11 = arith.cmpi ne, %10, %c0_i32_8 : i32
    scf.if %11 {
      %c0_9 = arith.constant 0 : index
      %c0_10 = arith.constant 0 : index
      %12 = vector.load %arg5[%c0_9, %c0_10] : memref<4x4xf32, #tpu.memory_space<vmem>>, vector<4x4xf32>
      %cst_11 = arith.constant 9.765625E-4 : f32
      %13 = vector.broadcast %cst_11 : f32 to vector<4x4xf32>
      %14 = arith.mulf %12, %13 : vector<4x4xf32>
      %15 = vector.shape_cast %14 : vector<4x4xf32> to vector<1x1x4x4xf32>
      %c0_12 = arith.constant 0 : index
      %c0_13 = arith.constant 0 : index
      %c0_14 = arith.constant 0 : index
      %c0_15 = arith.constant 0 : index
      %16 = vector.load %arg4[%c0_12, %c0_13, %c0_14, %c0_15] : memref<1x1x4x4xf32, #tpu.memory_space<vmem>>, vector<1x1x4x4xf32>
      tpu.vector_store %arg4[%c0_12, %c0_13, %c0_14, %c0_15], %15 {strides = array<i32>} : memref<1x1x4x4xf32, #tpu.memory_space<vmem>>, vector<1x1x4x4xf32>,
    } else {
    }
    return
  }
  func.func @transform_0(%arg0: i32, %arg1: i32, %arg2: i32) -> (i32, i32, i32) {
    %c1_i32 = arith.constant 1 : i32
    %0 = arith.muli %arg1, %c1_i32 : i32
    %1 = arith.addi %0, %arg2 : i32
    %c0_i32 = arith.constant 0 : i32
    %2 = arith.minsi %1, %c0_i32 : i32
    %c0_i32_0 = arith.constant 0 : i32
    %c0_i32_1 = arith.constant 0 : i32
    return %arg0, %c0_i32_0, %2 : i32, i32, i32
  }
  func.func @transform_1(%arg0: i32, %arg1: i32, %arg2: i32) -> (i32, i32, i32, i32) {
    %c0_i32 = arith.constant 0 : i32
    %c0_i32_0 = arith.constant 0 : i32
    %c0_i32_1 = arith.constant 0 : i32
    return %arg0, %arg1, %c0_i32, %c0_i32_0 : i32, i32, i32, i32
  }
}

</mosaic_0001>

<bundles_post_ra>
// kernel: tpu_custom_call.1
= control target key start
LH: loop header
LB: loop body
LE: loop exit
PB: predicated region body
PF: predicated region fallthrough
CT: control target
= control target key end

     0   :  { %6 = vsyncpa [#allocation4], 0  ;;  %s721_s0 = inlined_call_operand.hbm [shape: bf16[2,4,256], index: 0, kind: input, shape index: {}]   ;;  %s722_s1 = inlined_call_operand.hbm [shape: f32[2,1,4,4], index: 1, kind: output, shape index: {}]  }
   0x1   :  { %8 = vsyncpa [#allocation4 + $0x1], 0 }
   0x2   :  { %9 = vsyncpa [#allocation5], 0 }
   0x3   :  { %11 = vsyncpa [#allocation5 + $0x1], 0  ;;  %s546_s6 = smov 0   ;;  %s548_s7 = smov 0  }
   0x4   :  { %s550_s8 = smov 0   ;;  %s552_s9 = smov 0  }
   0x5   :  { %s554_s10 = smov 0   ;;  %s556_s11 = smov 0  }
   0x6 LB: > { %s340_s12 = sadd.s32 4294967295, %s531_s11   ;;  %s341_s13 = sadd.s32 4294967294, %s531_s11   ;;  %s531_s11 = sphi %s556_s11, %s17_s11   ;;  %s527_s10 = sphi %s554_s10, %s738_s10   ;;  %s523_s9 = sphi %s552_s9, %s737_s9   ;;  %s519_s8 = sphi %s550_s8, %s736_s8   ;;  %s515_s7 = sphi %s548_s7, %s735_s7   ;;  %s511_s6 = sphi %s546_s6, %s734_s6  }
   0x7   : > { %s36_s14 = sadd.s32 1, %s527_s10  ;;  %s51_s15 = sadd.s32 1, %s519_s8 }
   0x8   : > { %p38_p0 = scmp.ge.s32.totalorder %s36_s14, 2  ;;  %p58_p1 = scmp.ne.s32.totalorder %s519_s8, %s515_s7 }
   0x9   : > { %p59_p2 = scmp.eq.s32.totalorder %s531_s11, 0  ;;  %p64_p3 = scmp.ne.s32.totalorder %s515_s7, %s511_s6 }
   0xa   : > { %s740_s14 = smov (%p38_p0, %s36_s14), 0  ;;  %p65_p5 = scmp.eq.s32.totalorder %s340_s12, 0 }
   0xb   : > { %p587_p4 = por %p59_p2, %p58_p1  ;;  %s46_s17 = ssub.s32 %s527_s10, %s740_s14 }
   0xc   : > { %p90_p6 = scmp.eq.s32.totalorder %s340_s12, 1  ;;  %p49_p7 = scmp.eq.s32.totalorder %s46_s17, 0 }
   0xd   : > { %p593_p8 = por %p65_p5, %p64_p3  ;;  %p96_p10 = scmp.eq.s32.totalorder %s341_s13, 1 }
   0xe   : > { %p597_p9 = por %p90_p6, %p58_p1  ;;  %p368_p13 = scmp.lt.s32.totalorder %s531_s11, 2 }
   0xf   : > { %s602_s20 = scalar_select %p49_p7, %s519_s8, %s51_s15  }
  0x10   : > { %s726_s19 = scalar_select %p597_p9, 1, 0 }
  0x11   : > { %p604_p11 = por %p96_p10, %p64_p3  ;;  %s116_s22 = sand.u32 1, %s519_s8  }
  0x12   : > { %s344_s23 = sshll.u32 %s116_s22, 2  ;;  %s355_s24 = sshll.u32 %s527_s10, 6 }
  0x13   : > { %s727_s21 = scalar_select %p604_p11, 1, 0 }
  0x14   : > { %s615_s27 = scalar_lea.hbm %s721_s0, %s355_s24  ;;  %s120_s28 = scalar_lea.vmem [#allocation3], %s344_s23 }
  0x15   : > { %s133_s29 = sshll.u32 %s120_s28, 4  ;;  %p621_p0 = pnand %p368_p13, %p587_p4  ;;  %s617_s29 = int_to_ptr.vmem [resolvable:$true] %s133_s29 }
  0x16   : > { %s117_s2 = scalar_lea.sflag [#allocation4], %s116_s22  ;;  %s419_s3 = scalar_lea.hbm %s615_s27, 64 }
  0x17   : > { %p420_p3 = scmp.ne.s32.totalorder %s615_s27, %s419_s3  ;;  %p421_p5 = pneg %p621_p0 }
  0x18   : > { %s424_s12 = scalar_lea.hbm %s721_s0, 128  ;;  %p425_p4 = scmp.lt.u32.totalorder %s615_s27, %s721_s0 }
  0x19   : > { %p422_p6 = pnand %p421_p5, %p420_p3  ;;  %p426_p10 = scmp.lt.u32.totalorder %s424_s12, %s419_s3 }
  0x1a   : > { %p428_p12 = scmp.lt.u32.totalorder %s419_s3, %s615_s27 }
  0x1b   : > { %p423_p7 = pneg %p422_p6  ;;  %p427_p13 = por %p426_p10, %p425_p4 }
  0x1d   : > { %p429_p1 = por %p428_p12, %p427_p13 }
  0x1f   : > { %p430_p2 = pnand %p429_p1, %p423_p7 }
  0x21   : > { %433 = shalt.err (!%p430_p2)
}
  0x22   : > { %s434_s16 = scalar_lea.vmem %s617_s29, 64  ;;  %s533_s17 = smov [#allocation3]  }
  0x23   : > { %p435_p3 = scmp.ne.s32.totalorder %s617_s29, %s434_s16  ;;  %s439_s22 = sshll.u32 %s533_s17, 4  ;;  %s440_s22 = int_to_ptr.vmem [resolvable:$false] %s439_s22 }
  0x24   : > { %s441_s23 = scalar_lea.vmem %s440_s22, 128  ;;  %p442_p9 = scmp.lt.s32.totalorder %s617_s29, %s440_s22 }
  0x25   : > { %p437_p6 = pnand %p435_p3, %p421_p5  ;;  %p443_p4 = scmp.lt.s32.totalorder %s441_s23, %s434_s16 }
  0x27   : > { %p438_p11 = pneg %p437_p6  ;;  %p444_p10 = por %p443_p4, %p442_p9 }
  0x29   : > { %p445_p12 = pnand %p444_p10, %p438_p11 }
  0x2b   : > { %448 = shalt.err (!%p445_p12)
}
  0x2c   : > { %363 = dma.hbm_to_vmem [thread:$0]  (!%p621_p0), %s615_s27, 64, %s617_s29, %s117_s2  }
  0x2d   : > { %p729_p1 = scmp.lt.s32.totalorder %s531_s11, 3  ;;  %p730_p2 = scmp.ge.s32.totalorder %s531_s11, 1 }
  0x2f   : > { %p139_p5 = pnand %p730_p2, %p729_p1 }
  0x30   : > { %s657_s24 = sand.u32 (!%p139_p5), 1, %s515_s7  }
  0x31   : > { %142 = sbr.rel (%p139_p5) target bundleno = 307 (0x133), region = 24  ;;  %s348_s25 = sshll.u32 (!%p139_p5), %s657_s24, 2 }
  0x32   : > { %s145_s26 = scalar_lea.sflag (!%p139_p5), [#allocation4], %s657_s24  ;;  %s148_s28 = scalar_lea.vmem (!%p139_p5), [#allocation3], %s348_s25 }
  0x38   : > { %502 = dma.done.wait (%p593_p8), %s145_s26, 64  }
  0x39   : > { %504 = vsyncadd (%p593_p8), %s145_s26, 4294967232  ;;  %vm176_vm0 = vcmask 27648   ;;  %v534_v0 = vmov 0.0   ;;  %s352_s18 = sshll.u32 %s523_s9, 6  ;;  %s166_s27 = scalar_lea.vmem [#allocation6], %s348_s25 }
  0x3a   : > { %177 = vst.msk [vmem:[#allocation2] sm:$0xf] %vm176_vm0, %v534_v0  ;;  %v350_v1 = vld.sshfl [vmem:[%s148_s28] sm:$0x33 pattern:$0x76325410]  ;;  %s671_s3 = scalar_lea.hbm %s722_s1, %s352_s18 }
  0x3b   : > { %v188_v2 = vcombine.high %v350_v1, %v350_v1  ;;  %s255_s29 = sshll.u32 %s166_s27, 4  ;;  %s241_s4 = scalar_lea.sflag [#allocation5], %s657_s24  ;;  %s673_s29 = int_to_ptr.vmem [resolvable:$true] %s255_s29 }
  0x3c   : > { %s449_s5 = scalar_lea.vmem %s673_s29, 64  ;;  %p731_p9 = scmp.ne.s32.totalorder %s726_s19, 0 }
  0x3d   : > { %191 = vmatprep.subr.bf16.mxu0 %v188_v2  ;;  %223 = vmatprep.mubr.bf16.mxu0 %v188_v2  ;;  %p450_p8 = scmp.ne.s32.totalorder %s673_s29, %s449_s5  ;;  %s535_s9 = smov [#allocation6]  }
  0x3e   : > { %192 = vmatpush1.bf16.xpose.msra.mxu0 %v350_v1  ;;  %s453_s12 = sshll.u32 %s535_s9, 4  ;;  %s454_s12 = int_to_ptr.vmem [resolvable:$false] %s453_s12 }
  0x3f   : > { %p451_p11 = pnand %p450_p8, %p731_p9  ;;  %s455_s13 = scalar_lea.vmem %s454_s12, 128 }
  0x40   : > { %p456_p7 = scmp.lt.s32.totalorder %s673_s29, %s454_s12  ;;  %p457_p13 = scmp.lt.s32.totalorder %s455_s13, %s449_s5 }
  0x41   : > { %v179_v3 = vld [vmem:[#allocation2] sm:$0xf]  ;;  %p452_p0 = pneg %p451_p11 }
  0x42   : > { %p458_p3 = por %p457_p13, %p456_p7 }
  0x44   : > { %p459_p6 = pnand %p458_p3, %p452_p0 }
  0x45   : > { %224 = vmatmul.mubr.bf16.vlgmr.msra.gmra.mrb[0].mxu0 %v350_v1 }
 0x118   : > { %v225_v4 = vpop.f32.mrb[0].mxu0 }
 0x119   : > { %v231_v5 = vadd.f32 %v225_v4, %v179_v3  ;;  %v227_v6 = vpop.f32.mrb[1].mxu0 }
 0x11a   : > { %v228_v7 = vpop.f32.mrb[2].mxu0 }
 0x11b   : > { %233 = vst.msk [vmem:[#allocation2] sm:$0xf] %vm176_vm0, %v231_v5  ;;  %v229_v8 = vpop.f32.mrb[3].mxu0 }
 0x122   : > { %v237_v9 = vld [vmem:[#allocation2] sm:$0xf] }
 0x123   : > { %v238_v10 = vmul.f32 0.0009765625, %v237_v9 }
 0x125   : > { %239 = vst.msk [vmem:[%s166_s27] sm:$0xf] %vm176_vm0, %v238_v10 }
 0x126   : > { %462 = shalt.err (!%p459_p6)
}
 0x127   : > { %s463_s15 = scalar_lea.hbm %s671_s3, 64  ;;  %s467_s22 = scalar_lea.hbm %s722_s1, 128 }
 0x128   : > { %p464_p4 = scmp.ne.s32.totalorder %s671_s3, %s463_s15  ;;  %p468_p1 = scmp.lt.u32.totalorder %s671_s3, %s722_s1 }
 0x129   : > { %p469_p2 = scmp.lt.u32.totalorder %s467_s22, %s463_s15  ;;  %p471_p8 = scmp.lt.u32.totalorder %s463_s15, %s671_s3 }
 0x12a   : > { %p465_p10 = pnand %p464_p4, %p731_p9 }
 0x12b   : > { %p470_p5 = por %p469_p2, %p468_p1 }
 0x12c   : > { %p466_p12 = pneg %p465_p10 }
 0x12d   : > { %p472_p11 = por %p471_p8, %p470_p5 }
 0x12f   : > { %p473_p0 = pnand %p472_p11, %p466_p12 }
 0x131   : > { %476 = shalt.err (!%p473_p0)
}
 0x132   : > { %358 = dma.vmem_to_hbm [thread:$0]  (%p731_p9), %s673_s29, 64, %s671_s3, %s241_s4  }
 0x133 PF: > { %s267_s25 = sand.u32 1, %s511_s6   ;;  %p732_p7 = scmp.ne.s32.totalorder %s727_s21, 0 }
 0x134   : > { %p733_p13 = scmp.ge.s32.totalorder %s531_s11, 2  ;;  %s268_s26 = scalar_lea.sflag [#allocation5], %s267_s25 }
 0x136   : > { %p365_p3 = pnand %p733_p13, %p732_p7 }
 0x138   : > { %506 = dma.done.wait (!%p365_p3), %s268_s26, 64  }
 0x139   : > { %508 = vsyncadd (!%p365_p3), %s268_s26, 4294967232  ;;  %s17_s11 = sadd.s32 1, %s531_s11   ;;  %s734_s6 = smov %s515_s7 }
 0x13a   : > { %p14_p6 = scmp.ge.s32.totalorder %s17_s11, 4   ;;  %s735_s7 = smov %s519_s8 }
 0x13b   : > { %s736_s8 = smov %s602_s20  ;;  %s737_s9 = smov %s527_s10 }
 0x13c   : > { %s738_s10 = smov %s740_s14  ;;  %16 = sbr.rel (!%p14_p6) target bundleno = 6 (0x6), region = 77 }
 0x143   :  { %273 = vsyncpa [#allocation4], 1 }
 0x144   :  { %275 = vsyncpa [#allocation4 + $0x1], 1 }
 0x145   :  { %276 = vsyncpa [#allocation5], 1 }
 0x146   :  { %278 = vsyncpa [#allocation5 + $0x1], 1 }

</bundles_post_ra>
